<compile_context>
chip_gen: v7x
topology: tpu7x:2x2x1
jax: 0.10.0
libtpu: 0.0.40
codegen_flags: <defaults>
</compile_context>

<pallas_src>
import functools
import math

import jax
import jax.numpy as jnp
from jax import lax
from jax.experimental import pallas as pl
from jax.experimental.pallas import tpu as pltpu


# ---------------------------------------------------------------------------
# helpers
# ---------------------------------------------------------------------------
def _same_pad_lo(n):
    """TF-style SAME padding (stride 2, filter 3): top/left pad amount."""
    pad = 1 if n % 2 == 0 else 2
    return pad // 2


def _tiles(ho, time_tile):
    """Pick the time tile (multiple of 8 or the full extent) and tile count."""
    if ho <= time_tile:
        return ho, 1
    return time_tile, -(-ho // time_tile)


# ---------------------------------------------------------------------------
# kernel 1: Cin == 1 path  ->  fused (im2col'd) matmul + bias + relu + mask
# ---------------------------------------------------------------------------
def _mm_bias_relu_mask_kernel(p_ref, w_ref, b_ref, mask_ref, o_ref):
    """p_ref: [TT, Wo, 9], w_ref: [9, Co], b_ref: [1, Co], mask_ref: [TT, 1],
    o_ref: [TT, Wo, Co]."""
    tt, wo, k = p_ref.shape
    co = o_ref.shape[-1]
    p = p_ref[...].reshape(tt * wo, k)
    acc = jnp.dot(p, w_ref[...], preferred_element_type=jnp.float32)
    acc = jnp.maximum(acc + b_ref[...], 0.0)
    out = acc.reshape(tt, wo, co) * mask_ref[...][:, :, None]
    o_ref[...] = out.astype(o_ref.dtype)


def _conv_subsample_cin1(x_bhw, w_hwio, bias, mask, *, time_tile):
    """Cin == 1 conv.  x_bhw: [B, H, W] (no channel dim -> freq on lanes)."""
    B, H, W = x_bhw.shape
    Co = w_hwio.shape[-1]
    Ho, Wo = -(-H // 2), -(-W // 2)
    tt, nt = _tiles(Ho, time_tile)
    ho_pad = nt * tt
    pad_t, pad_f = _same_pad_lo(H), _same_pad_lo(W)
    xp = jnp.pad(
        x_bhw,
        ((0, 0),
         (pad_t, 2 * ho_pad + 1 - H - pad_t),
         (pad_f, 2 * Wo + 1 - W - pad_f)))

    # Wrapper-side 9-tap im2col (layout plumbing; the Cin==1 frame is tiny).
    taps = []
    for kh in range(3):
        for kw in range(3):
            taps.append(lax.slice(
                xp, (0, kh, kw),
                (B, kh + 2 * ho_pad - 1, kw + 2 * Wo - 1),
                (1, 2, 2)))
    patches = jnp.stack(taps, axis=-1)                      # [B, ho_pad, Wo, 9]
    w9 = w_hwio.reshape(9, Co)
    mask_p = jnp.pad(mask, ((0, 0), (0, ho_pad - mask.shape[1])))[:, :, None]

    flops = 2 * B * ho_pad * Wo * 9 * Co
    bytes_accessed = 4 * (patches.size + w9.size + B * ho_pad * Wo * Co)
    out = pl.pallas_call(
        _mm_bias_relu_mask_kernel,
        out_shape=jax.ShapeDtypeStruct((B, ho_pad, Wo, Co), jnp.float32),
        grid=(B, nt),
        in_specs=[
            pl.BlockSpec((None, tt, Wo, 9), lambda b, j: (b, j, 0, 0)),
            pl.BlockSpec((9, Co), lambda b, j: (0, 0)),
            pl.BlockSpec((1, Co), lambda b, j: (0, 0)),
            pl.BlockSpec((None, tt, 1), lambda b, j: (b, j, 0)),
        ],
        out_specs=pl.BlockSpec((None, tt, Wo, Co), lambda b, j: (b, j, 0, 0)),
        compiler_params=pltpu.CompilerParams(
            dimension_semantics=("parallel", "parallel"),
            vmem_limit_bytes=32 * 1024 * 1024),
        cost_estimate=pl.CostEstimate(flops=flops, transcendentals=0,
                                      bytes_accessed=bytes_accessed),
    )(patches, w9, bias.reshape(1, Co), mask_p)
    return out[:, :Ho]                                       # [B, Ho, Wo, Co]


# ---------------------------------------------------------------------------
# kernel 2: general Cin path  ->  3x3 stride-2 conv, time-tiled with halo row
# ---------------------------------------------------------------------------
def _conv3x3s2_bias_relu_mask_kernel(x_ref, xh_ref, w_ref, b_ref, mask_ref,
                                     o_ref, *, mxu_dtype):
    """x_ref:  [2*TT, Wp, Cin]   main rows of this time tile
       xh_ref: [1, Wp, Cin]      halo row (row 2*TT of the tile window)
       w_ref:  [3, 3, Cin, Co]   (already in mxu_dtype)
       b_ref:  [1, Co], mask_ref: [TT, 1], o_ref: [TT, Wo, Co]."""
    tt, wo, co = o_ref.shape
    cin = x_ref.shape[-1]
    acc = jnp.zeros((tt * wo, co), jnp.float32)
    for kh in range(3):
        for kw in range(3):
            if kh < 2:
                p = x_ref[pl.ds(kh, tt, 2), pl.ds(kw, wo, 2), :]
            else:
                parts = []
                if tt > 1:
                    parts.append(x_ref[pl.ds(2, tt - 1, 2), pl.ds(kw, wo, 2), :])
                parts.append(xh_ref[:, pl.ds(kw, wo, 2), :])
                p = parts[0] if len(parts) == 1 else jnp.concatenate(parts, axis=0)
            p2 = p.reshape(tt * wo, cin).astype(mxu_dtype)
            acc = acc + jnp.dot(p2, w_ref[kh, kw],
                                preferred_element_type=jnp.float32)
    acc = jnp.maximum(acc + b_ref[...], 0.0)
    out = acc.reshape(tt, wo, co) * mask_ref[...][:, :, None]
    o_ref[...] = out.astype(o_ref.dtype)


def _conv_subsample_general(x_nhwc, w_hwio, bias, mask, *, mxu_dtype, time_tile):
    B, H, W, Cin = x_nhwc.shape
    Co = w_hwio.shape[-1]
    Ho, Wo = -(-H // 2), -(-W // 2)
    tt, nt = _tiles(Ho, time_tile)
    ho_pad = nt * tt
    pad_t, pad_f = _same_pad_lo(H), _same_pad_lo(W)
    xp = jnp.pad(
        x_nhwc,
        ((0, 0),
         (pad_t, 2 * ho_pad + 1 - H - pad_t),
         (pad_f, 2 * Wo + 1 - W - pad_f),
         (0, 0)))
    w_padded = 2 * Wo + 1
    w_mxu = w_hwio.astype(mxu_dtype)
    mask_p = jnp.pad(mask, ((0, 0), (0, ho_pad - mask.shape[1])))[:, :, None]

    flops = 2 * B * ho_pad * Wo * 9 * Cin * Co
    bytes_accessed = int(xp.size * 4 + w_mxu.size * w_mxu.dtype.itemsize
                         + B * ho_pad * Wo * Co * 4)
    kernel = functools.partial(_conv3x3s2_bias_relu_mask_kernel,
                               mxu_dtype=mxu_dtype)
    out = pl.pallas_call(
        kernel,
        out_shape=jax.ShapeDtypeStruct((B, ho_pad, Wo, Co), jnp.float32),
        grid=(B, nt),
        in_specs=[
            # main time-tile window: output rows [tt*j, tt*(j+1)) need input
            # rows [2*tt*j, 2*tt*(j+1)) ...
            pl.BlockSpec((None, 2 * tt, w_padded, Cin),
                         lambda b, j: (b, j, 0, 0)),
            # ... plus one halo row 2*tt*(j+1)  (block size 1 -> element index).
            pl.BlockSpec((None, 1, w_padded, Cin),
                         lambda b, j: (b, 2 * tt * (j + 1), 0, 0)),
            pl.BlockSpec((3, 3, Cin, Co), lambda b, j: (0, 0, 0, 0)),
            pl.BlockSpec((1, Co), lambda b, j: (0, 0)),
            pl.BlockSpec((None, tt, 1), lambda b, j: (b, j, 0)),
        ],
        out_specs=pl.BlockSpec((None, tt, Wo, Co), lambda b, j: (b, j, 0, 0)),
        compiler_params=pltpu.CompilerParams(
            dimension_semantics=("parallel", "parallel"),
            vmem_limit_bytes=32 * 1024 * 1024),
        cost_estimate=pl.CostEstimate(flops=flops, transcendentals=0,
                                      bytes_accessed=bytes_accessed),
    )(xp, xp, w_mxu, bias.reshape(1, Co), mask_p)
    return out[:, :Ho]                                       # [B, Ho, Wo, Co]


# ---------------------------------------------------------------------------
# public module-equivalent forward
# ---------------------------------------------------------------------------
def conv2d_subsampling(inputs, paddings, kernel, bias, *, padding='SAME',
                       mxu_dtype=jnp.bfloat16, time_tile=16):
    """Pallas-TPU forward of Conv2dSubsampling (3x3 filter, stride (2,2)).

    inputs:   [B, C, H, W]  (NCHW like the torch module; H = time, W = freq)
    paddings: [B, H]        1.0 where the frame is padding
    kernel:   [Co, Cin, 3, 3]   (torch OIHW layout)
    bias:     [Co]
    Returns (outputs [B, Co, Ho, Wo], out_paddings [B, Ho]).
    """
    assert padding == 'SAME', "TODO(synk): only padding='SAME' is implemented"
    assert time_tile % 8 == 0
    B, C, H, W = inputs.shape
    Co, Cin, kh, kw = kernel.shape
    assert (kh, kw) == (3, 3)
    # groups = C // input_channels in the torch module; the librispeech
    # workload always uses groups == 1.
    assert C == Cin, "TODO(synk): grouped conv (groups > 1) not implemented"
    assert paddings.shape == (B, H)

    # out_padding == conv1d(padded paddings, ones([1,1,1]), stride=2): every
    # other frame.  Scalar bookkeeping, kept in XLA.
    out_paddings = paddings[:, ::2]
    mask = (1.0 - out_paddings).astype(jnp.float32)          # [B, Ho]

    w_hwio = jnp.transpose(kernel, (2, 3, 1, 0)).astype(jnp.float32)
    if Cin == 1:
        out_nhwc = _conv_subsample_cin1(
            inputs[:, 0].astype(jnp.float32), w_hwio, bias, mask,
            time_tile=time_tile)
    else:
        x_nhwc = jnp.transpose(inputs, (0, 2, 3, 1)).astype(jnp.float32)
        out_nhwc = _conv_subsample_general(
            x_nhwc, w_hwio, bias, mask, mxu_dtype=mxu_dtype,
            time_tile=time_tile)
    outputs = jnp.transpose(out_nhwc, (0, 3, 1, 2))          # back to NCHW
    return outputs, out_paddings


# ---------------------------------------------------------------------------
# pure-JAX reference (mirrors the torch forward exactly)
# ---------------------------------------------------------------------------
def conv2d_subsampling_reference(inputs, paddings, kernel, bias):
    B, C, H, W = inputs.shape
    pad_h = 1 if H % 2 == 0 else 2
    pad_w = 1 if W % 2 == 0 else 2
    pt, pb = pad_h // 2, pad_h - pad_h // 2
    pleft, pright = pad_w // 2, pad_w - pad_w // 2
    x = jnp.pad(inputs, ((0, 0), (0, 0), (pt, pb), (pleft, pright)))
    out = lax.conv_general_dilated(
        x, kernel, window_strides=(2, 2), padding='VALID',
        dimension_numbers=('NCHW', 'OIHW', 'NCHW'))
    out = jnp.maximum(out + bias[None, :, None, None], 0.0)
    out_paddings = paddings[:, ::2]
    out = out * (1.0 - out_paddings)[:, None, :, None]
    return out, out_paddings


# ---------------------------------------------------------------------------
# demo / self-test
# ---------------------------------------------------------------------------
if __name__ == "__main__":
    key = jax.random.PRNGKey(0)
    B, T, F, D = 2, 16, 16, 8          # batch, time, freq, output channels
    k_in, k1, k2 = jax.random.split(key, 3)
    inputs = jax.random.normal(k_in, (B, 1, T, F), jnp.float32)   # NCHW, Cin=1
    input_paddings = jnp.zeros((B, T), jnp.float32).at[1, 12:].set(1.0)

    def xavier(k, shape):
        fan_in = shape[1] * shape[2] * shape[3]
        fan_out = shape[0] * shape[2] * shape[3]
        bound = math.sqrt(6.0 / (fan_in + fan_out))
        return jax.random.uniform(k, shape, jnp.float32, -bound, bound)

    kernel1 = xavier(k1, (D, 1, 3, 3))          # Cin == 1 path
    bias1 = jnp.zeros((D,), jnp.float32)
    kernel2 = xavier(k2, (D, D, 3, 3))          # general Cin path
    bias2 = jnp.zeros((D,), jnp.float32)

    @functools.partial(jax.jit, static_argnames=("mxu_dtype",))
    def two_layer(x, p, mxu_dtype):
        y1, p1 = conv2d_subsampling(x, p, kernel1, bias1, mxu_dtype=mxu_dtype)
        y2, p2 = conv2d_subsampling(y1, p1, kernel2, bias2, mxu_dtype=mxu_dtype)
        return y1, p1, y2, p2

    # Reference chain.
    r1, rp1 = conv2d_subsampling_reference(inputs, input_paddings, kernel1, bias1)
    r2, rp2 = conv2d_subsampling_reference(r1, rp1, kernel2, bias2)

    # f32-MXU run: correctness check.
    y1, p1, y2, p2 = jax.block_until_ready(
        two_layer(inputs, input_paddings, jnp.float32))
    assert y1.shape == (B, D, (T + 1) // 2, (F + 1) // 2), y1.shape
    assert y2.shape == (B, D, (T + 3) // 4, (F + 3) // 4), y2.shape
    assert p2.shape == (B, (T + 3) // 4), p2.shape
    assert jnp.array_equal(p1, rp1) and jnp.array_equal(p2, rp2)
    assert jnp.allclose(y1, r1, atol=2e-2, rtol=2e-2), float(jnp.abs(y1 - r1).max())
    assert jnp.allclose(y2, r2, atol=2e-2, rtol=2e-2), float(jnp.abs(y2 - r2).max())

    # bf16-MXU run (the v6e/v7x performance configuration): loose check.
    y1b, p1b, y2b, p2b = jax.block_until_ready(
        two_layer(inputs, input_paddings, jnp.bfloat16))
    assert jnp.array_equal(p2b, rp2)
    assert jnp.allclose(y2b, r2, atol=5e-2, rtol=5e-2), float(jnp.abs(y2b - r2).max())

    print("KERNEL_OK")
</pallas_src>

<mosaic_0001>
module attributes {stable_mosaic.version = 11 : i64} {
  func.func @_mm_bias_relu_mask_kernel(%arg0: i32, %arg1: i32, %arg2: memref<1x8x8x9xf32, #tpu.memory_space<vmem>>, %arg3: memref<9x8xf32, #tpu.memory_space<vmem>>, %arg4: memref<1x8xf32, #tpu.memory_space<vmem>>, %arg5: memref<1x8x1xf32, #tpu.memory_space<vmem>>, %arg6: memref<1x8x8x8xf32, #tpu.memory_space<vmem>>) attributes {dimension_semantics = [#tpu.dimension_semantics<parallel>, #tpu.dimension_semantics<parallel>], iteration_bounds = array<i64: 2, 1>, scalar_prefetch = 0 : i64, scratch_operands = 0 : i64, tpu.core_type = #tpu.core_type<tc>, window_params = [{transform_indices = @transform_0, window_bounds = array<i64: 1, 8, 8, 9>}, {pipeline_mode = #tpu.pipeline_mode<synchronous>, transform_indices = @transform_1, window_bounds = array<i64: 9, 8>}, {pipeline_mode = #tpu.pipeline_mode<synchronous>, transform_indices = @transform_2, window_bounds = array<i64: 1, 8>}, {transform_indices = @transform_3, window_bounds = array<i64: 1, 8, 1>}, {transform_indices = @transform_4, window_bounds = array<i64: 1, 8, 8, 8>}]} {
    %c0 = arith.constant 0 : index
    %c0_0 = arith.constant 0 : index
    %c0_1 = arith.constant 0 : index
    %c0_2 = arith.constant 0 : index
    %0 = vector.load %arg2[%c0, %c0_0, %c0_1, %c0_2] : memref<1x8x8x9xf32, #tpu.memory_space<vmem>>, vector<1x8x8x9xf32>
    %1 = vector.shape_cast %0 : vector<1x8x8x9xf32> to vector<8x8x9xf32>
    %2 = vector.shape_cast %1 : vector<8x8x9xf32> to vector<64x9xf32>
    %c0_3 = arith.constant 0 : index
    %c0_4 = arith.constant 0 : index
    %3 = vector.load %arg3[%c0_3, %c0_4] : memref<9x8xf32, #tpu.memory_space<vmem>>, vector<9x8xf32>
    %cst = arith.constant dense<0.000000e+00> : vector<64x8xf32>
    %4 = tpu.matmul %2, %3, %cst {dimension_numbers = #tpu.dot_dimension_numbers<[1], [0], [0], [1], [0, 0, 1, 1], [], []>} : vector<64x9xf32>, vector<9x8xf32>, vector<64x8xf32> -> vector<64x8xf32>
    %c0_5 = arith.constant 0 : index
    %c0_6 = arith.constant 0 : index
    %5 = vector.load %arg4[%c0_5, %c0_6] : memref<1x8xf32, #tpu.memory_space<vmem>>, vector<1x8xf32>
    %6 = vector.broadcast %5 : vector<1x8xf32> to vector<64x8xf32>
    %7 = arith.addf %4, %6 : vector<64x8xf32>
    %cst_7 = arith.constant 0.000000e+00 : f32
    %8 = vector.broadcast %cst_7 : f32 to vector<64x8xf32>
    %9 = arith.maximumf %7, %8 : vector<64x8xf32>
    %10 = vector.shape_cast %9 : vector<64x8xf32> to vector<8x8x8xf32>
    %c0_8 = arith.constant 0 : index
    %c0_9 = arith.constant 0 : index
    %c0_10 = arith.constant 0 : index
    %11 = vector.load %arg5[%c0_8, %c0_9, %c0_10] : memref<1x8x1xf32, #tpu.memory_space<vmem>>, vector<1x8x1xf32>
    %12 = vector.shape_cast %11 : vector<1x8x1xf32> to vector<8x1xf32>
    %13 = vector.shape_cast %12 : vector<8x1xf32> to vector<8x1x1xf32>
    %14 = vector.broadcast %13 : vector<8x1x1xf32> to vector<8x8x8xf32>
    %15 = arith.mulf %10, %14 : vector<8x8x8xf32>
    %c0_11 = arith.constant 0 : index
    %c0_12 = arith.constant 0 : index
    %c0_13 = arith.constant 0 : index
    %c0_14 = arith.constant 0 : index
    %16 = vector.load %arg6[%c0_11, %c0_12, %c0_13, %c0_14] : memref<1x8x8x8xf32, #tpu.memory_space<vmem>>, vector<1x8x8x8xf32>
    %17 = vector.shape_cast %16 : vector<1x8x8x8xf32> to vector<8x8x8xf32>
    %18 = vector.shape_cast %15 : vector<8x8x8xf32> to vector<1x8x8x8xf32>
    tpu.vector_store %arg6[%c0_11, %c0_12, %c0_13, %c0_14], %18 {strides = array<i32>} : memref<1x8x8x8xf32, #tpu.memory_space<vmem>>, vector<1x8x8x8xf32>,
    return
  }
  func.func @transform_0(%arg0: i32, %arg1: i32) -> (i32, i32, i32, i32) {
    %c0_i32 = arith.constant 0 : i32
    %c0_i32_0 = arith.constant 0 : i32
    %c0_i32_1 = arith.constant 0 : i32
    return %arg0, %arg1, %c0_i32, %c0_i32_0 : i32, i32, i32, i32
  }
  func.func @transform_1(%arg0: i32, %arg1: i32) -> (i32, i32) {
    %c0_i32 = arith.constant 0 : i32
    %c0_i32_0 = arith.constant 0 : i32
    %c0_i32_1 = arith.constant 0 : i32
    return %c0_i32, %c0_i32_0 : i32, i32
  }
  func.func @transform_2(%arg0: i32, %arg1: i32) -> (i32, i32) {
    %c0_i32 = arith.constant 0 : i32
    %c0_i32_0 = arith.constant 0 : i32
    %c0_i32_1 = arith.constant 0 : i32
    return %c0_i32, %c0_i32_0 : i32, i32
  }
  func.func @transform_3(%arg0: i32, %arg1: i32) -> (i32, i32, i32) {
    %c0_i32 = arith.constant 0 : i32
    %c0_i32_0 = arith.constant 0 : i32
    return %arg0, %arg1, %c0_i32 : i32, i32, i32
  }
  func.func @transform_4(%arg0: i32, %arg1: i32) -> (i32, i32, i32, i32) {
    %c0_i32 = arith.constant 0 : i32
    %c0_i32_0 = arith.constant 0 : i32
    %c0_i32_1 = arith.constant 0 : i32
    return %arg0, %arg1, %c0_i32, %c0_i32_0 : i32, i32, i32, i32
  }
}

module attributes {stable_mosaic.version = 11 : i64} {
  func.func @_conv3x3s2_bias_relu_mask_kernel(%arg0: i32, %arg1: i32, %arg2: memref<1x8x9x8xf32, #tpu.memory_space<vmem>>, %arg3: memref<1x1x9x8xf32, #tpu.memory_space<vmem>>, %arg4: memref<3x3x8x8xf32, #tpu.memory_space<vmem>>, %arg5: memref<1x8xf32, #tpu.memory_space<vmem>>, %arg6: memref<1x4x1xf32, #tpu.memory_space<vmem>>, %arg7: memref<1x4x4x8xf32, #tpu.memory_space<vmem>>) attributes {dimension_semantics = [#tpu.dimension_semantics<parallel>, #tpu.dimension_semantics<parallel>], iteration_bounds = array<i64: 2, 1>, scalar_prefetch = 0 : i64, scratch_operands = 0 : i64, tpu.core_type = #tpu.core_type<tc>, window_params = [{transform_indices = @transform_0, window_bounds = array<i64: 1, 8, 9, 8>}, {transform_indices = @transform_1, window_bounds = array<i64: 1, 1, 9, 8>}, {pipeline_mode = #tpu.pipeline_mode<synchronous>, transform_indices = @transform_2, window_bounds = array<i64: 3, 3, 8, 8>}, {pipeline_mode = #tpu.pipeline_mode<synchronous>, transform_indices = @transform_3, window_bounds = array<i64: 1, 8>}, {transform_indices = @transform_4, window_bounds = array<i64: 1, 4, 1>}, {transform_indices = @transform_5, window_bounds = array<i64: 1, 4, 4, 8>}]} {
    %cst = arith.constant 0.000000e+00 : f32
    %0 = vector.broadcast %cst : f32 to vector<16x8xf32>
    %c0 = arith.constant 0 : index
    %c0_0 = arith.constant 0 : index
    %c0_1 = arith.constant 0 : index
    %c0_2 = arith.constant 0 : index
    %1 = tpu.strided_load %arg2[%c0, %c0_0, %c0_1, %c0_2] {strides = array<i32: 1, 2, 2, 1>} : memref<1x8x9x8xf32, #tpu.memory_space<vmem>>, vector<1x4x4x8xf32>
    %2 = vector.shape_cast %1 : vector<1x4x4x8xf32> to vector<4x4x8xf32>
    %3 = vector.shape_cast %2 : vector<4x4x8xf32> to vector<16x8xf32>
    %c0_3 = arith.constant 0 : index
    %c0_4 = arith.constant 0 : index
    %c0_5 = arith.constant 0 : index
    %c0_6 = arith.constant 0 : index
    %4 = vector.load %arg4[%c0_3, %c0_4, %c0_5, %c0_6] : memref<3x3x8x8xf32, #tpu.memory_space<vmem>>, vector<1x1x8x8xf32>
    %5 = vector.shape_cast %4 : vector<1x1x8x8xf32> to vector<8x8xf32>
    %cst_7 = arith.constant dense<0.000000e+00> : vector<16x8xf32>
    %6 = tpu.matmul %3, %5, %cst_7 {dimension_numbers = #tpu.dot_dimension_numbers<[1], [0], [0], [1], [0, 0, 1, 1], [], []>} : vector<16x8xf32>, vector<8x8xf32>, vector<16x8xf32> -> vector<16x8xf32>
    %7 = arith.addf %0, %6 : vector<16x8xf32>
    %c0_8 = arith.constant 0 : index
    %c0_9 = arith.constant 0 : index
    %c1 = arith.constant 1 : index
    %c0_10 = arith.constant 0 : index
    %8 = tpu.strided_load %arg2[%c0_8, %c0_9, %c1, %c0_10] {strides = array<i32: 1, 2, 2, 1>} : memref<1x8x9x8xf32, #tpu.memory_space<vmem>>, vector<1x4x4x8xf32>
    %9 = vector.shape_cast %8 : vector<1x4x4x8xf32> to vector<4x4x8xf32>
    %10 = vector.shape_cast %9 : vector<4x4x8xf32> to vector<16x8xf32>
    %c0_11 = arith.constant 0 : index
    %c1_12 = arith.constant 1 : index
    %c0_13 = arith.constant 0 : index
    %c0_14 = arith.constant 0 : index
    %11 = vector.load %arg4[%c0_11, %c1_12, %c0_13, %c0_14] : memref<3x3x8x8xf32, #tpu.memory_space<vmem>>, vector<1x1x8x8xf32>
    %12 = vector.shape_cast %11 : vector<1x1x8x8xf32> to vector<8x8xf32>
    %cst_15 = arith.constant dense<0.000000e+00> : vector<16x8xf32>
    %13 = tpu.matmul %10, %12, %cst_15 {dimension_numbers = #tpu.dot_dimension_numbers<[1], [0], [0], [1], [0, 0, 1, 1], [], []>} : vector<16x8xf32>, vector<8x8xf32>, vector<16x8xf32> -> vector<16x8xf32>
    %14 = arith.addf %7, %13 : vector<16x8xf32>
    %c0_16 = arith.constant 0 : index
    %c0_17 = arith.constant 0 : index
    %c2 = arith.constant 2 : index
    %c0_18 = arith.constant 0 : index
    %15 = tpu.strided_load %arg2[%c0_16, %c0_17, %c2, %c0_18] {strides = array<i32: 1, 2, 2, 1>} : memref<1x8x9x8xf32, #tpu.memory_space<vmem>>, vector<1x4x4x8xf32>
    %16 = vector.shape_cast %15 : vector<1x4x4x8xf32> to vector<4x4x8xf32>
    %17 = vector.shape_cast %16 : vector<4x4x8xf32> to vector<16x8xf32>
    %c0_19 = arith.constant 0 : index
    %c2_20 = arith.constant 2 : index
    %c0_21 = arith.constant 0 : index
    %c0_22 = arith.constant 0 : index
    %18 = vector.load %arg4[%c0_19, %c2_20, %c0_21, %c0_22] : memref<3x3x8x8xf32, #tpu.memory_space<vmem>>, vector<1x1x8x8xf32>
    %19 = vector.shape_cast %18 : vector<1x1x8x8xf32> to vector<8x8xf32>
    %cst_23 = arith.constant dense<0.000000e+00> : vector<16x8xf32>
    %20 = tpu.matmul %17, %19, %cst_23 {dimension_numbers = #tpu.dot_dimension_numbers<[1], [0], [0], [1], [0, 0, 1, 1], [], []>} : vector<16x8xf32>, vector<8x8xf32>, vector<16x8xf32> -> vector<16x8xf32>
    %21 = arith.addf %14, %20 : vector<16x8xf32>
    %c0_24 = arith.constant 0 : index
    %c1_25 = arith.constant 1 : index
    %c0_26 = arith.constant 0 : index
    %c0_27 = arith.constant 0 : index
    %22 = tpu.strided_load %arg2[%c0_24, %c1_25, %c0_26, %c0_27] {strides = array<i32: 1, 2, 2, 1>} : memref<1x8x9x8xf32, #tpu.memory_space<vmem>>, vector<1x4x4x8xf32>
    %23 = vector.shape_cast %22 : vector<1x4x4x8xf32> to vector<4x4x8xf32>
    %24 = vector.shape_cast %23 : vector<4x4x8xf32> to vector<16x8xf32>
    %c1_28 = arith.constant 1 : index
    %c0_29 = arith.constant 0 : index
    %c0_30 = arith.constant 0 : index
    %c0_31 = arith.constant 0 : index
    %25 = vector.load %arg4[%c1_28, %c0_29, %c0_30, %c0_31] : memref<3x3x8x8xf32, #tpu.memory_space<vmem>>, vector<1x1x8x8xf32>
    %26 = vector.shape_cast %25 : vector<1x1x8x8xf32> to vector<8x8xf32>
    %cst_32 = arith.constant dense<0.000000e+00> : vector<16x8xf32>
    %27 = tpu.matmul %24, %26, %cst_32 {dimension_numbers = #tpu.dot_dimension_numbers<[1], [0], [0], [1], [0, 0, 1, 1], [], []>} : vector<16x8xf32>, vector<8x8xf32>, vector<16x8xf32> -> vector<16x8xf32>
    %28 = arith.addf %21, %27 : vector<16x8xf32>
    %c0_33 = arith.constant 0 : index
    %c1_34 = arith.constant 1 : index
    %c1_35 = arith.constant 1 : index
    %c0_36 = arith.constant 0 : index
    %29 = tpu.strided_load %arg2[%c0_33, %c1_34, %c1_35, %c0_36] {strides = array<i32: 1, 2, 2, 1>} : memref<1x8x9x8xf32, #tpu.memory_space<vmem>>, vector<1x4x4x8xf32>
    %30 = vector.shape_cast %29 : vector<1x4x4x8xf32> to vector<4x4x8xf32>
    %31 = vector.shape_cast %30 : vector<4x4x8xf32> to vector<16x8xf32>
    %c1_37 = arith.constant 1 : index
    %c1_38 = arith.constant 1 : index
    %c0_39 = arith.constant 0 : index
    %c0_40 = arith.constant 0 : index
    %32 = vector.load %arg4[%c1_37, %c1_38, %c0_39, %c0_40] : memref<3x3x8x8xf32, #tpu.memory_space<vmem>>, vector<1x1x8x8xf32>
    %33 = vector.shape_cast %32 : vector<1x1x8x8xf32> to vector<8x8xf32>
    %cst_41 = arith.constant dense<0.000000e+00> : vector<16x8xf32>
    %34 = tpu.matmul %31, %33, %cst_41 {dimension_numbers = #tpu.dot_dimension_numbers<[1], [0], [0], [1], [0, 0, 1, 1], [], []>} : vector<16x8xf32>, vector<8x8xf32>, vector<16x8xf32> -> vector<16x8xf32>
    %35 = arith.addf %28, %34 : vector<16x8xf32>
    %c0_42 = arith.constant 0 : index
    %c1_43 = arith.constant 1 : index
    %c2_44 = arith.constant 2 : index
    %c0_45 = arith.constant 0 : index
    %36 = tpu.strided_load %arg2[%c0_42, %c1_43, %c2_44, %c0_45] {strides = array<i32: 1, 2, 2, 1>} : memref<1x8x9x8xf32, #tpu.memory_space<vmem>>, vector<1x4x4x8xf32>
    %37 = vector.shape_cast %36 : vector<1x4x4x8xf32> to vector<4x4x8xf32>
    %38 = vector.shape_cast %37 : vector<4x4x8xf32> to vector<16x8xf32>
    %c1_46 = arith.constant 1 : index
    %c2_47 = arith.constant 2 : index
    %c0_48 = arith.constant 0 : index
    %c0_49 = arith.constant 0 : index
    %39 = vector.load %arg4[%c1_46, %c2_47, %c0_48, %c0_49] : memref<3x3x8x8xf32, #tpu.memory_space<vmem>>, vector<1x1x8x8xf32>
    %40 = vector.shape_cast %39 : vector<1x1x8x8xf32> to vector<8x8xf32>
    %cst_50 = arith.constant dense<0.000000e+00> : vector<16x8xf32>
    %41 = tpu.matmul %38, %40, %cst_50 {dimension_numbers = #tpu.dot_dimension_numbers<[1], [0], [0], [1], [0, 0, 1, 1], [], []>} : vector<16x8xf32>, vector<8x8xf32>, vector<16x8xf32> -> vector<16x8xf32>
    %42 = arith.addf %35, %41 : vector<16x8xf32>
    %c0_51 = arith.constant 0 : index
    %c2_52 = arith.constant 2 : index
    %c0_53 = arith.constant 0 : index
    %c0_54 = arith.constant 0 : index
    %43 = tpu.strided_load %arg2[%c0_51, %c2_52, %c0_53, %c0_54] {strides = array<i32: 1, 2, 2, 1>} : memref<1x8x9x8xf32, #tpu.memory_space<vmem>>, vector<1x3x4x8xf32>
    %44 = vector.shape_cast %43 : vector<1x3x4x8xf32> to vector<3x4x8xf32>
    %c0_55 = arith.constant 0 : index
    %c0_56 = arith.constant 0 : index
    %c0_57 = arith.constant 0 : index
    %c0_58 = arith.constant 0 : index
    %45 = tpu.strided_load %arg3[%c0_55, %c0_56, %c0_57, %c0_58] {strides = array<i32: 1, 1, 2, 1>} : memref<1x1x9x8xf32, #tpu.memory_space<vmem>>, vector<1x1x4x8xf32>
    %46 = vector.shape_cast %45 : vector<1x1x4x8xf32> to vector<1x4x8xf32>
    %47 = tpu.concatenate %44, %46 in 0 : vector<3x4x8xf32>, vector<1x4x8xf32> -> vector<4x4x8xf32>
    %48 = vector.shape_cast %47 : vector<4x4x8xf32> to vector<16x8xf32>
    %c2_59 = arith.constant 2 : index
    %c0_60 = arith.constant 0 : index
    %c0_61 = arith.constant 0 : index
    %c0_62 = arith.constant 0 : index
    %49 = vector.load %arg4[%c2_59, %c0_60, %c0_61, %c0_62] : memref<3x3x8x8xf32, #tpu.memory_space<vmem>>, vector<1x1x8x8xf32>
    %50 = vector.shape_cast %49 : vector<1x1x8x8xf32> to vector<8x8xf32>
    %cst_63 = arith.constant dense<0.000000e+00> : vector<16x8xf32>
    %51 = tpu.matmul %48, %50, %cst_63 {dimension_numbers = #tpu.dot_dimension_numbers<[1], [0], [0], [1], [0, 0, 1, 1], [], []>} : vector<16x8xf32>, vector<8x8xf32>, vector<16x8xf32> -> vector<16x8xf32>
    %52 = arith.addf %42, %51 : vector<16x8xf32>
    %c0_64 = arith.constant 0 : index
    %c2_65 = arith.constant 2 : index
    %c1_66 = arith.constant 1 : index
    %c0_67 = arith.constant 0 : index
    %53 = tpu.strided_load %arg2[%c0_64, %c2_65, %c1_66, %c0_67] {strides = array<i32: 1, 2, 2, 1>} : memref<1x8x9x8xf32, #tpu.memory_space<vmem>>, vector<1x3x4x8xf32>
    %54 = vector.shape_cast %53 : vector<1x3x4x8xf32> to vector<3x4x8xf32>
    %c0_68 = arith.constant 0 : index
    %c0_69 = arith.constant 0 : index
    %c1_70 = arith.constant 1 : index
    %c0_71 = arith.constant 0 : index
    %55 = tpu.strided_load %arg3[%c0_68, %c0_69, %c1_70, %c0_71] {strides = array<i32: 1, 1, 2, 1>} : memref<1x1x9x8xf32, #tpu.memory_space<vmem>>, vector<1x1x4x8xf32>
    %56 = vector.shape_cast %55 : vector<1x1x4x8xf32> to vector<1x4x8xf32>
    %57 = tpu.concatenate %54, %56 in 0 : vector<3x4x8xf32>, vector<1x4x8xf32> -> vector<4x4x8xf32>
    %58 = vector.shape_cast %57 : vector<4x4x8xf32> to vector<16x8xf32>
    %c2_72 = arith.constant 2 : index
    %c1_73 = arith.constant 1 : index
    %c0_74 = arith.constant 0 : index
    %c0_75 = arith.constant 0 : index
    %59 = vector.load %arg4[%c2_72, %c1_73, %c0_74, %c0_75] : memref<3x3x8x8xf32, #tpu.memory_space<vmem>>, vector<1x1x8x8xf32>
    %60 = vector.shape_cast %59 : vector<1x1x8x8xf32> to vector<8x8xf32>
    %cst_76 = arith.constant dense<0.000000e+00> : vector<16x8xf32>
    %61 = tpu.matmul %58, %60, %cst_76 {dimension_numbers = #tpu.dot_dimension_numbers<[1], [0], [0], [1], [0, 0, 1, 1], [], []>} : vector<16x8xf32>, vector<8x8xf32>, vector<16x8xf32> -> vector<16x8xf32>
    %62 = arith.addf %52, %61 : vector<16x8xf32>
    %c0_77 = arith.constant 0 : index
    %c2_78 = arith.constant 2 : index
    %c2_79 = arith.constant 2 : index
    %c0_80 = arith.constant 0 : index
    %63 = tpu.strided_load %arg2[%c0_77, %c2_78, %c2_79, %c0_80] {strides = array<i32: 1, 2, 2, 1>} : memref<1x8x9x8xf32, #tpu.memory_space<vmem>>, vector<1x3x4x8xf32>
    %64 = vector.shape_cast %63 : vector<1x3x4x8xf32> to vector<3x4x8xf32>
    %c0_81 = arith.constant 0 : index
    %c0_82 = arith.constant 0 : index
    %c2_83 = arith.constant 2 : index
    %c0_84 = arith.constant 0 : index
    %65 = tpu.strided_load %arg3[%c0_81, %c0_82, %c2_83, %c0_84] {strides = array<i32: 1, 1, 2, 1>} : memref<1x1x9x8xf32, #tpu.memory_space<vmem>>, vector<1x1x4x8xf32>
    %66 = vector.shape_cast %65 : vector<1x1x4x8xf32> to vector<1x4x8xf32>
    %67 = tpu.concatenate %64, %66 in 0 : vector<3x4x8xf32>, vector<1x4x8xf32> -> vector<4x4x8xf32>
    %68 = vector.shape_cast %67 : vector<4x4x8xf32> to vector<16x8xf32>
    %c2_85 = arith.constant 2 : index
    %c2_86 = arith.constant 2 : index
    %c0_87 = arith.constant 0 : index
    %c0_88 = arith.constant 0 : index
    %69 = vector.load %arg4[%c2_85, %c2_86, %c0_87, %c0_88] : memref<3x3x8x8xf32, #tpu.memory_space<vmem>>, vector<1x1x8x8xf32>
    %70 = vector.shape_cast %69 : vector<1x1x8x8xf32> to vector<8x8xf32>
    %cst_89 = arith.constant dense<0.000000e+00> : vector<16x8xf32>
    %71 = tpu.matmul %68, %70, %cst_89 {dimension_numbers = #tpu.dot_dimension_numbers<[1], [0], [0], [1], [0, 0, 1, 1], [], []>} : vector<16x8xf32>, vector<8x8xf32>, vector<16x8xf32> -> vector<16x8xf32>
    %72 = arith.addf %62, %71 : vector<16x8xf32>
    %c0_90 = arith.constant 0 : index
    %c0_91 = arith.constant 0 : index
    %73 = vector.load %arg5[%c0_90, %c0_91] : memref<1x8xf32, #tpu.memory_space<vmem>>, vector<1x8xf32>
    %74 = vector.broadcast %73 : vector<1x8xf32> to vector<16x8xf32>
    %75 = arith.addf %72, %74 : vector<16x8xf32>
    %cst_92 = arith.constant 0.000000e+00 : f32
    %76 = vector.broadcast %cst_92 : f32 to vector<16x8xf32>
    %77 = arith.maximumf %75, %76 : vector<16x8xf32>
    %78 = vector.shape_cast %77 : vector<16x8xf32> to vector<4x4x8xf32>
    %c0_93 = arith.constant 0 : index
    %c0_94 = arith.constant 0 : index
    %c0_95 = arith.constant 0 : index
    %79 = vector.load %arg6[%c0_93, %c0_94, %c0_95] : memref<1x4x1xf32, #tpu.memory_space<vmem>>, vector<1x4x1xf32>
    %80 = vector.shape_cast %79 : vector<1x4x1xf32> to vector<4x1xf32>
    %81 = vector.shape_cast %80 : vector<4x1xf32> to vector<4x1x1xf32>
    %82 = vector.broadcast %81 : vector<4x1x1xf32> to vector<4x4x8xf32>
    %83 = arith.mulf %78, %82 : vector<4x4x8xf32>
    %c0_96 = arith.constant 0 : index
    %c0_97 = arith.constant 0 : index
    %c0_98 = arith.constant 0 : index
    %c0_99 = arith.constant 0 : index
    %84 = vector.load %arg7[%c0_96, %c0_97, %c0_98, %c0_99] : memref<1x4x4x8xf32, #tpu.memory_space<vmem>>, vector<1x4x4x8xf32>
    %85 = vector.shape_cast %84 : vector<1x4x4x8xf32> to vector<4x4x8xf32>
    %86 = vector.shape_cast %83 : vector<4x4x8xf32> to vector<1x4x4x8xf32>
    tpu.vector_store %arg7[%c0_96, %c0_97, %c0_98, %c0_99], %86 {strides = array<i32>} : memref<1x4x4x8xf32, #tpu.memory_space<vmem>>, vector<1x4x4x8xf32>,
    return
  }
  func.func @transform_0(%arg0: i32, %arg1: i32) -> (i32, i32, i32, i32) {
    %c0_i32 = arith.constant 0 : i32
    %c0_i32_0 = arith.constant 0 : i32
    %c0_i32_1 = arith.constant 0 : i32
    return %arg0, %arg1, %c0_i32, %c0_i32_0 : i32, i32, i32, i32
  }
  func.func @transform_1(%arg0: i32, %arg1: i32) -> (i32, i32, i32, i32) {
    %c1_i32 = arith.constant 1 : i32
    %0 = arith.addi %arg1, %c1_i32 : i32
    %c8_i32 = arith.constant 8 : i32
    %1 = arith.muli %c8_i32, %0 : i32
    %c0_i32 = arith.constant 0 : i32
    %c0_i32_0 = arith.constant 0 : i32
    %c0_i32_1 = arith.constant 0 : i32
    return %arg0, %1, %c0_i32, %c0_i32_0 : i32, i32, i32, i32
  }
  func.func @transform_2(%arg0: i32, %arg1: i32) -> (i32, i32, i32, i32) {
    %c0_i32 = arith.constant 0 : i32
    %c0_i32_0 = arith.constant 0 : i32
    %c0_i32_1 = arith.constant 0 : i32
    %c0_i32_2 = arith.constant 0 : i32
    %c0_i32_3 = arith.constant 0 : i32
    return %c0_i32, %c0_i32_0, %c0_i32_1, %c0_i32_2 : i32, i32, i32, i32
  }
  func.func @transform_3(%arg0: i32, %arg1: i32) -> (i32, i32) {
    %c0_i32 = arith.constant 0 : i32
    %c0_i32_0 = arith.constant 0 : i32
    %c0_i32_1 = arith.constant 0 : i32
    return %c0_i32, %c0_i32_0 : i32, i32
  }
  func.func @transform_4(%arg0: i32, %arg1: i32) -> (i32, i32, i32) {
    %c0_i32 = arith.constant 0 : i32
    %c0_i32_0 = arith.constant 0 : i32
    return %arg0, %arg1, %c0_i32 : i32, i32, i32
  }
  func.func @transform_5(%arg0: i32, %arg1: i32) -> (i32, i32, i32, i32) {
    %c0_i32 = arith.constant 0 : i32
    %c0_i32_0 = arith.constant 0 : i32
    %c0_i32_1 = arith.constant 0 : i32
    return %arg0, %arg1, %c0_i32, %c0_i32_0 : i32, i32, i32, i32
  }
}

</mosaic_0001>

<bundles_post_ra>
// kernel: two_layer.2
= control target key start
LH: loop header
LB: loop body
LE: loop exit
PB: predicated region body
PF: predicated region fallthrough
CT: control target
= control target key end

     0   :  { %s798_s15 = smov 0   ;;  %s800_s16 = smov 0   ;;  %s877_s0 = inlined_call_operand.vmem [shape: f32[2,8,8,9], index: 0, kind: input, shape index: {}]   ;;  %s878_s1 = inlined_call_operand.vmem [shape: f32[9,8], index: 1, kind: input, shape index: {}]   ;;  %s879_s2 = inlined_call_operand.vmem [shape: f32[1,8], index: 2, kind: input, shape index: {}]   ;;  %s880_s3 = inlined_call_operand.vmem [shape: f32[2,8,1], index: 3, kind: input, shape index: {}]   ;;  %s881_s4 = inlined_call_operand.vmem [shape: f32[2,8,8,8], index: 4, kind: output, shape index: {}]  }
   0x1   :  { %s802_s17 = smov 0  }
   0x2 LB: > { %s26_s18 = sadd.s32 1, %s764_s16  ;;  %p662_p0 = scmp.ge.s32.totalorder %s768_s17, 1  ;;  %s768_s17 = sphi %s802_s17, %s14_s17   ;;  %s764_s16 = sphi %s800_s16, %s883_s16   ;;  %s760_s15 = sphi %s798_s15, %s882_s15  }
   0x3   : > { %p28_p1 = scmp.ge.s32.totalorder %s26_s18, 2  ;;  %p197_p2 = scmp.lt.s32.totalorder %s768_s17, 3 }
   0x5   : > { %s885_s18 = smov (%p28_p1, %s26_s18), 0  ;;  %p198_p3 = pnand %p662_p0, %p197_p2 }
   0x6   : > { %v273_v0 = vld [vmem:[%s878_s1] sm:$0xff] (!%p198_p3)  ;;  %v274_v1 = vld [vmem:[%s878_s1 + $0x8] sm:$0x1] (!%p198_p3)  ;;  %vm307_vm0 = vcmask (!%p198_p3), 1040384   ;;  %p239_p4 = scmp.lt.s32.totalorder (!%p198_p3), %s760_s15, 1  ;;  %v430_v2 = vlaneseq (!%p198_p3)  ;;  %vm770_vm1 = vmmov (!%p198_p3), 1  }
   0x7   : > { %201 = sbr.rel (%p198_p3) target bundleno = 244 (0xf4), region = 36  ;;  %v708_v3 = vpack.c.bf16 (!%p198_p3), %v274_v1, %v273_v0  ;;  %vm709_vm2 = vmpackc.low (!%p198_p3), %vm307_vm0, %vm770_vm1  ;;  %v771_v4 = vmov (!%p198_p3), 0   ;;  %v772_v5 = vmov (!%p198_p3), 1966171168   ;;  %vm282_vm3 = vcmask (!%p198_p3), 72704  }
   0x8   : > { %744 = vset.pattern.permute.xlu1 (!%p198_p3), %v771_v4  ;;  %743 = vset.pattern.permute.xlu0 (!%p198_p3), %v771_v4  ;;  %v428_v6 = vunpack.c.l.s4 (!%p198_p3), %v772_v5  ;;  %v431_v7 = vshrl.u32 (!%p198_p3), %v430_v2, 7  ;;  %v668_v45 = vld [vmem:[%s879_s2] ss:$0 sm:$0xff] (!%p198_p3)  ;;  %vm547_vm4 = vcmask (!%p198_p3), 64512  }
   0x9   : > { %710 = vmatprep.subr.msk.bf16.mxu0 (!%p198_p3), %vm709_vm2, %v708_v3  ;;  %714 = vmatprep.subr.msk.bf16.mxu1 (!%p198_p3), %vm709_vm2, %v708_v3 }
   0xa   : > { %713 = vmatpush3.bf16.msk.msra.mxu0 (!%p198_p3), %vm709_vm2, %v708_v3  ;;  %715 = vmatpush3.bf16.msk.msra.mxu1 (!%p198_p3), %vm709_vm2, %v708_v3  ;;  %v429_v8 = vunpack.c.0.s8 (!%p198_p3), %v428_v6  ;;  %v477_v20 = vsub.s32 (!%p198_p3), 0, %v431_v7 }
   0xc   : > { %v432_v12 = vsub.s32 (!%p198_p3), %v429_v8, %v431_v7 }
   0xe   : > { %s887_s15 = smov (!%p239_p4, %s760_s15), 1 }
   0xf   : > { %s680_s23 = sshll.u32 %s887_s15, 6  ;;  %s665_s24 = sshll.u32 %s887_s15, 3 }
  0x10   : > { %s246_s27 = scalar_lea.vmem %s877_s0, %s680_s23  ;;  %s254_s30 = scalar_lea.vmem %s880_s3, %s665_s24 }
  0x11   : > { %v265_v9 = vld [vmem:[%s246_s27] sm:$0xff]  ;;  %v266_v11 = vld [vmem:[%s246_s27 + $0x8] sm:$0xff]  ;;  %v267_v14 = vld [vmem:[%s246_s27 + $0x10] sm:$0xff]  ;;  %s850_s9 = scalar_lea.vmem %s881_s4, %s680_s23 }
  0x12   : > { %v269_v10 = vld [vmem:[%s246_s27 + $0x20] sm:$0xff]  ;;  %696 = vmatprep.mubr.msk.f32.mxu0 %vm282_vm3, %v265_v9  ;;  %v270_v13 = vld [vmem:[%s246_s27 + $0x28] sm:$0xff]  ;;  %v271_v15 = vld [vmem:[%s246_s27 + $0x30] sm:$0xff] }
  0x13   : > { %702 = vmatprep.mubr.msk.f32.mxu1 %vm282_vm3, %v269_v10  ;;  %697 = vmatmul.mubr.msk.f32.vlgmr.msra.gmra.mrb[0].mxu0 %vm282_vm3, %v266_v11  ;;  %v424_v16 = vld [vmem:[%s254_s30] sm:$0xff]  ;;  %v268_v17 = vld [vmem:[%s246_s27 + $0x18] sm:$0xff] }
  0x14   : > { %703 = vmatmul.mubr.msk.f32.vlgmr.msra.gmra.mrb[0].mxu1 %vm282_vm3, %v270_v13  ;;  %699 = vmatprep.mubr.msk.f32.mxu0 %vm282_vm3, %v267_v14  ;;  %v272_v18 = vld [vmem:[%s246_s27 + $0x38] sm:$0xff]  ;;  %v433_v19 = vrot.slane %v424_v16, %v432_v12  ;;  %v426_v21 = vcombine.high %v424_v16, %v424_v16 }
  0x15   : > { %705 = vmatprep.mubr.msk.f32.mxu1 %vm282_vm3, %v271_v15 }
  0x16   : > { %v449_v22 = vrot.slane %v433_v19, %v432_v12  ;;  %v441_v23 = vcombine.high %v433_v19, %v433_v19  ;;  %v440_v24 = vrot.slane %v426_v21, %v432_v12 }
  0x17   : > { %700 = vmatmul.mubr.msk.f32.gmra.mrb[2].mxu0 %vm282_vm3, %v268_v17 }
  0x18   : > { %706 = vmatmul.mubr.msk.f32.gmra.mrb[2].mxu1 %vm282_vm3, %v272_v18  ;;  %v478_v25 = vrot.slane %v449_v22, %v477_v20  ;;  %v471_v26 = vcombine.high %v449_v22, %v449_v22  ;;  %v463_v27 = vrot.slane %v441_v23, %v432_v12  ;;  %v442_v28 = vcombine.high %v440_v24, %v440_v24 }
  0x19   : > { %v456_v32 = vrot.slane %v440_v24, %v432_v12 }
  0x1a   : > { %508 = vperm.xlu0 %743, %v478_v25   ;;  %v486_v29 = vrot.slane %v471_v26, %v477_v20  ;;  %v482_v30 = vrot.slane %v463_v27, %v477_v20  ;;  %v473_v31 = vcombine.high %v463_v27, %v463_v27  ;;  %v470_v34 = vrot.slane %v442_v28, %v432_v12 }
  0x1b   : > { %v494_v35 = vrot.slane %v456_v32, %v477_v20  ;;  %v472_v36 = vcombine.high %v456_v32, %v456_v32 }
  0x1c   : > { %516 = vperm.xlu1 %744, %v486_v29   ;;  %v490_v33 = vrot.slane %v473_v31, %v477_v20  ;;  %v498_v37 = vrot.slane %v470_v34, %v477_v20  ;;  %v474_v38 = vcombine.high %v470_v34, %v470_v34 }
  0x1d   : > { %v502_v39 = vrot.slane %v472_v36, %v477_v20 }
  0x1e   : > { %512 = vperm.xlu0 %743, %v482_v30   ;;  %v506_v40 = vrot.slane %v474_v38, %v477_v20 }
  0x20   : > { %520 = vperm.xlu1 %744, %v490_v33  }
  0x22   : > { %524 = vperm.xlu0 %743, %v494_v35  }
  0x24   : > { %528 = vperm.xlu1 %744, %v498_v37  }
  0x26   : > { %532 = vperm.xlu0 %743, %v502_v39  }
  0x28   : > { %536 = vperm.xlu1 %744, %v506_v40  }
  0x99   : > { %v509_v42 = vpop.permute.xlu0 %508 }
  0x9b   : > { %v517_v41 = vpop.permute.xlu1 %516 }
  0x9d   : > { %v513_v44 = vpop.permute.xlu0 %512 }
  0x9f   : > { %v521_v43 = vpop.permute.xlu1 %520 }
  0xa1   : > { %v525_v55 = vpop.permute.xlu0 %524 }
  0xa3   : > { %v529_v52 = vpop.permute.xlu1 %528 }
  0xa5   : > { %v533_v13 = vpop.permute.xlu0 %532 }
  0xa7   : > { %v537_v10 = vpop.permute.xlu1 %536 }
  0xe6   : > { %v698_v46 = vpop.f32.mrb[0].mxu0 }
  0xe7   : > { %v704_v47 = vpop.f32.mrb[0].mxu1  ;;  %v383_v48 = vadd.f32 %v698_v46, %v668_v45  ;;  %v377_v50 = vpop.f32.mrb[1].mxu0 }
  0xe8   : > { %v403_v49 = vadd.f32 %v704_v47, %v668_v45  ;;  %v397_v51 = vpop.f32.mrb[1].mxu1  ;;  %v378_v53 = vadd.f32 %v668_v45, %v377_v50 }
  0xe9   : > { %v398_v54 = vadd.f32 %v668_v45, %v397_v51  ;;  %v417_v56 = vmax.f32 %v383_v48, 0.0 }
  0xea   : > { %v421_v57 = vmax.f32 %v403_v49, 0.0  ;;  %v416_v58 = vmax.f32 %v378_v53, 0.0  ;;  %v701_v60 = vpop.f32.mrb[2].mxu0 }
  0xeb   : > { %v420_v59 = vmax.f32 %v398_v54, 0.0  ;;  %v707_v61 = vpop.f32.mrb[2].mxu1  ;;  %v540_v62 = vmul.f32 %v513_v44, %v417_v56  ;;  %v393_v0 = vadd.f32 %v701_v60, %v668_v45  ;;  %v387_v2 = vpop.f32.mrb[3].mxu0 }
  0xec   : > { %v544_v63 = vmul.f32 %v529_v52, %v421_v57  ;;  %v413_v1 = vadd.f32 %v707_v61, %v668_v45  ;;  %v407_v3 = vpop.f32.mrb[3].mxu1  ;;  %v539_v4 = vmul.f32 %v509_v42, %v416_v58  ;;  %v388_v6 = vadd.f32 %v668_v45, %v387_v2 }
  0xed   : > { %v543_v5 = vmul.f32 %v525_v55, %v420_v59  ;;  %v408_v7 = vadd.f32 %v668_v45, %v407_v3  ;;  %549 = vst.msk [vmem:[%s850_s9 + $0x8] sm:$0xff] %vm547_vm4, %v540_v62  ;;  %v419_v8 = vmax.f32 %v393_v0, 0.0 }
  0xee   : > { %553 = vst.msk [vmem:[%s850_s9 + $0x28] sm:$0xff] %vm547_vm4, %v544_v63  ;;  %v423_v9 = vmax.f32 %v413_v1, 0.0  ;;  %548 = vst.msk [vmem:[%s850_s9] sm:$0xff] %vm547_vm4, %v539_v4  ;;  %v418_v11 = vmax.f32 %v388_v6, 0.0 }
  0xef   : > { %552 = vst.msk [vmem:[%s850_s9 + $0x20] sm:$0xff] %vm547_vm4, %v543_v5  ;;  %v422_v12 = vmax.f32 %v408_v7, 0.0  ;;  %v542_v14 = vmul.f32 %v521_v43, %v419_v8 }
  0xf0   : > { %v546_v15 = vmul.f32 %v537_v10, %v423_v9  ;;  %v541_v16 = vmul.f32 %v517_v41, %v418_v11 }
  0xf1   : > { %v545_v17 = vmul.f32 %v533_v13, %v422_v12  ;;  %551 = vst.msk [vmem:[%s850_s9 + $0x18] sm:$0xff] %vm547_vm4, %v542_v14 }
  0xf2   : > { %555 = vst.msk [vmem:[%s850_s9 + $0x38] sm:$0xff] %vm547_vm4, %v546_v15  ;;  %550 = vst.msk [vmem:[%s850_s9 + $0x10] sm:$0xff] %vm547_vm4, %v541_v16 }
  0xf3   : > { %554 = vst.msk [vmem:[%s850_s9 + $0x30] sm:$0xff] %vm547_vm4, %v545_v17 }
  0xf4 PF: > { %s14_s17 = sadd.s32 1, %s768_s17   ;;  %s882_s15 = smov %s764_s16 }
  0xf5   : > { %p11_p5 = scmp.ge.s32.totalorder %s14_s17, 4   ;;  %s883_s16 = smov %s885_s18 }
  0xf7   :  { %13 = sbr.rel (!%p11_p5) target bundleno = 2 (0x2), region = 69 }

// kernel: two_layer.3
= control target key start
LH: loop header
LB: loop body
LE: loop exit
PB: predicated region body
PF: predicated region fallthrough
CT: control target
= control target key end

     0   :  { %10 = vsyncpa [#allocation3], 0  ;;  %s2028_s0 = inlined_call_operand.vmem [shape: f32[2,9,9,8], index: 0, kind: input, shape index: {}, may-alias: {0,1}]   ;;  %s2029_s1 = inlined_call_operand.vmem [shape: f32[2,9,9,8], index: 1, kind: input, shape index: {}, may-alias: {0,1}]   ;;  %s2030_s2 = inlined_call_operand.vmem [shape: f32[3,3,8,8], index: 2, kind: input, shape index: {}]   ;;  %s2031_s3 = inlined_call_operand.vmem [shape: f32[1,8], index: 3, kind: input, shape index: {}]   ;;  %s2032_s4 = inlined_call_operand.vmem [shape: f32[2,4,1], index: 4, kind: input, shape index: {}]   ;;  %s2033_s5 = inlined_call_operand.hbm [shape: f32[2,4,4,8], index: 5, kind: output, shape index: {}]  }
   0x1   :  { %12 = vsyncpa [#allocation3 + $0x1], 0  ;;  %s1808_s18 = smov 0   ;;  %s1810_s19 = smov 0  }
   0x2   :  { %s1812_s20 = smov 0   ;;  %s1814_s21 = smov 0  }
   0x3   :  { %s1816_s22 = smov 0   ;;  %s1818_s23 = smov 0  }
   0x4 LB: > { %s1462_s24 = sadd.s32 4294967295, %s1771_s23   ;;  %s1463_s25 = sadd.s32 4294967294, %s1771_s23   ;;  %s1771_s23 = sphi %s1818_s23, %s18_s23   ;;  %s1767_s22 = sphi %s1816_s22, %s2040_s22   ;;  %s1763_s21 = sphi %s1814_s21, %s2039_s21   ;;  %s1759_s20 = sphi %s1812_s20, %s2038_s20   ;;  %s1755_s19 = sphi %s1810_s19, %s2037_s19   ;;  %s1751_s18 = sphi %s1808_s18, %s2036_s18  }
   0x5   : > { %s30_s26 = sadd.s32 1, %s1767_s22  ;;  %s169_s27 = sadd.s32 1, %s1759_s20 }
   0x6   : > { %p32_p0 = scmp.ge.s32.totalorder %s30_s26, 2  ;;  %p179_p1 = scmp.ne.s32.totalorder %s1759_s20, %s1755_s19 }
   0x7   : > { %p180_p2 = scmp.eq.s32.totalorder %s1462_s24, 1  ;;  %p185_p3 = scmp.ne.s32.totalorder %s1755_s19, %s1751_s18 }
   0x8   : > { %s2042_s26 = smov (%p32_p0, %s30_s26), 0  ;;  %p186_p5 = scmp.eq.s32.totalorder %s1463_s25, 1 }
   0x9   : > { %p1848_p4 = por %p180_p2, %p179_p1  ;;  %s164_s29 = ssub.s32 %s1767_s22, %s2042_s26 }
   0xa   : > { %p1466_p6 = scmp.ge.s32.totalorder %s1771_s23, 1  ;;  %p167_p7 = scmp.eq.s32.totalorder %s164_s29, 0 }
   0xb   : > { %p1855_p8 = por %p186_p5, %p185_p3  ;;  %p260_p9 = scmp.lt.s32.totalorder %s1771_s23, 3 }
   0xc   : > { %s1861_s6 = scalar_select %p167_p7, %s1759_s20, %s169_s27  }
   0xd   : > { %p261_p10 = pnand %p1466_p6, %p260_p9 }
   0xe   : > { %v1501_v0 = vld [vmem:[%s2030_s2 + $0x20] sm:$0xff] (!%p261_p10)  ;;  %v1478_v1 = vld [vmem:[%s2030_s2 + $0x8] sm:$0xff] (!%p261_p10)  ;;  %p322_p11 = scmp.lt.s32.totalorder (!%p261_p10), %s1763_s21, 1  ;;  %v1255_v3 = vlaneseq (!%p261_p10)  ;;  %v1773_v5 = vmov (!%p261_p10), 1966171168   ;;  %v1774_v8 = vmov (!%p261_p10), 0  }
   0xf   : > { %264 = sbr.rel (%p261_p10) target bundleno = 304 (0x130), region = 40  ;;  %v1508_v2 = vld [vmem:[%s2030_s2 + $0x28] sm:$0xff] (!%p261_p10)  ;;  %1588 = vmatprep.subr.mxu0 (!%p261_p10), %v1501_v0  ;;  %1568 = vmatprep.subr.mxu1 (!%p261_p10), %v1478_v1  ;;  %v365_v4 = vld [vmem:[%s2030_s2] sm:$0xff] (!%p261_p10)  ;;  %v1253_v6 = vunpack.c.l.s4 (!%p261_p10), %v1773_v5  ;;  %vm382_vm0 = vcmask (!%p261_p10), 64512   ;;  %v1514_v27 = vld [vmem:[%s2030_s2 + $0x30] sm:$0xff] (!%p261_p10)  ;;  %vm1304_vm1 = vcmask (!%p261_p10), 60416  }
  0x10   : > { %1589 = vmatpush3.msra.mxu0 (!%p261_p10), %v1501_v0  ;;  %1569 = vmatpush3.msra.mxu1 (!%p261_p10), %v1478_v1  ;;  %v1256_v7 = vshrl.u32 (!%p261_p10), %v1255_v3, 7  ;;  %v1487_v33 = vld [vmem:[%s2030_s2 + $0x10] sm:$0xff] (!%p261_p10)  ;;  %v1521_v54 = vld [vmem:[%s2030_s2 + $0x38] sm:$0xff] (!%p261_p10)  ;;  %s1540_s14 = sshll.u32 (!%p261_p10), %s1763_s21, 8  ;;  %s1775_s25 = smov (!%p261_p10), [#allocation2]  }
  0x11   : > { %1593 = vmatprep.subr.mxu0 (!%p261_p10), %v1508_v2  ;;  %1573 = vmatprep.subr.mxu1 (!%p261_p10), %v365_v4  ;;  %v1254_v9 = vunpack.c.0.s8 (!%p261_p10), %v1253_v6  ;;  %v1494_v55 = vld [vmem:[%s2030_s2 + $0x18] sm:$0xff] (!%p261_p10) }
  0x12   : > { %1692 = vset.pattern.permute.xlu1 (!%p261_p10), %v1774_v8  ;;  %1691 = vset.pattern.permute.xlu0 (!%p261_p10), %v1774_v8  ;;  %v1270_v12 = vsub.s32 (!%p261_p10), 0, %v1256_v7 }
  0x13   : > { %v1257_v11 = vsub.s32 (!%p261_p10), %v1254_v9, %v1256_v7 }
  0x16   : > { %s323_s15 = scalar_select %p322_p11, %s1763_s21, 1 }
  0x18   : > { %s1629_s16 = smul.u32 144, %s323_s15  ;;  %s1470_s17 = sshll.u32 %s323_s15, 2 }
  0x19   : > { %s356_s27 = scalar_lea.vmem %s2032_s4, %s1470_s17  ;;  %s1975_s17 = scalar_lea.hbm %s2033_s5, %s1540_s14 }
  0x1a   : > { %s1883_s8 = scalar_lea.vmem %s2028_s0, %s1629_s16  ;;  %s1885_s9 = sadd.s32 128, %s1629_s16  ;;  %v1532_v10 = vld.sshfl [vmem:[%s356_s27] sm:$0x33 pattern:$0x75316420] }
  0x1b   : > { %v1474_v13 = vld [vmem:[%s1883_s8 + $0x1] ss:$2 sm:$0xf]  ;;  %v1251_v15 = vcombine.high %v1532_v10, %v1532_v10  ;;  %v1497_v17 = vld [vmem:[%s1883_s8 + $0x11] ss:$2 sm:$0xf]  ;;  %v1258_v19 = vrot.slane %v1532_v10, %v1257_v11  ;;  %s1923_s16 = scalar_lea.vmem %s2029_s1, %s1885_s9 }
  0x1c   : > { %v1475_v14 = vld [vmem:[%s1883_s8 + $0x21] ss:$2 sm:$0xf]  ;;  %v1498_v18 = vld [vmem:[%s1883_s8 + $0x31] ss:$2 sm:$0xf] }
  0x1d   : > { %v380_v16 = vcombine.low %v1474_v13, %v1475_v14  ;;  %v755_v20 = vcombine.low %v1497_v17, %v1498_v18  ;;  %v1476_v21 = vld [vmem:[%s1883_s8 + $0x41] ss:$2 sm:$0xf]  ;;  %v1265_v23 = vrot.slane %v1251_v15, %v1257_v11  ;;  %v1499_v25 = vld [vmem:[%s1883_s8 + $0x51] ss:$2 sm:$0xf]  ;;  %v1271_v28 = vrot.slane %v1258_v19, %v1270_v12 }
  0x1e   : > { %v1477_v22 = vld [vmem:[%s1883_s8 + $0x61] ss:$2 sm:$0xf]  ;;  %v1500_v26 = vld [vmem:[%s1883_s8 + $0x71] ss:$2 sm:$0xf]  ;;  %v1266_v29 = vcombine.high %v1258_v19, %v1258_v19 }
  0x1f   : > { %1570 = vmatprep.mubr.msk.f32.mxu1 %vm382_vm0, %v380_v16  ;;  %v381_v24 = vcombine.low %v1476_v21, %v1477_v22  ;;  %1590 = vmatprep.mubr.msk.f32.mxu0 %vm382_vm0, %v755_v20  ;;  %v756_v30 = vcombine.low %v1499_v25, %v1500_v26  ;;  %v358_v31 = vld [vmem:[%s1883_s8] ss:$2 sm:$0xf]  ;;  %v1504_v35 = vld [vmem:[%s1883_s8 + $0x12] ss:$2 sm:$0xf]  ;;  %v1267_v38 = vcombine.high %v1265_v23, %v1265_v23 }
  0x20   : > { %v1471_v32 = vld [vmem:[%s1883_s8 + $0x20] ss:$2 sm:$0xf]  ;;  %v1505_v36 = vld [vmem:[%s1883_s8 + $0x32] ss:$2 sm:$0xf]  ;;  %1285 = vperm.xlu0 %1691, %v1271_v28   ;;  %v1279_v37 = vrot.slane %v1266_v29, %v1270_v12  ;;  %v1275_v42 = vrot.slane %v1265_v23, %v1270_v12 }
  0x21   : > { %1571 = vmatmul.mubr.msk.f32.vlgmr.msra.gmra.mrb[0].mxu1 %vm382_vm0, %v381_v24  ;;  %v466_v34 = vcombine.low %v358_v31, %v1471_v32  ;;  %1591 = vmatmul.mubr.msk.f32.vlgmr.msra.gmra.mrb[0].mxu0 %vm382_vm0, %v756_v30  ;;  %v852_v39 = vcombine.low %v1504_v35, %v1505_v36  ;;  %v1472_v40 = vld [vmem:[%s1883_s8 + $0x40] ss:$2 sm:$0xf]  ;;  %v1506_v43 = vld [vmem:[%s1883_s8 + $0x52] ss:$2 sm:$0xf]  ;;  %v1283_v50 = vrot.slane %v1267_v38, %v1270_v12 }
  0x22   : > { %1574 = vmatpush3.msra.mxu1 %v365_v4  ;;  %v1473_v41 = vld [vmem:[%s1883_s8 + $0x60] ss:$2 sm:$0xf]  ;;  %1594 = vmatpush3.msra.mxu0 %v1508_v2  ;;  %v1507_v44 = vld [vmem:[%s1883_s8 + $0x72] ss:$2 sm:$0xf] }
  0x23   : > { %1575 = vmatprep.mubr.msk.f32.mxu1 %vm382_vm0, %v466_v34  ;;  %1595 = vmatprep.mubr.msk.f32.mxu0 %vm382_vm0, %v852_v39  ;;  %v1483_v45 = vld [vmem:[%s1883_s8 + $0x2] ss:$2 sm:$0xf]  ;;  %v467_v47 = vcombine.low %v1472_v40, %v1473_v41  ;;  %v853_v51 = vcombine.low %v1506_v43, %v1507_v44  ;;  %v1490_v60 = vld [vmem:[%s1883_s8 + $0x10] ss:$2 sm:$0xf] }
  0x24   : > { %1598 = vmatprep.subr.mxu0 %v1514_v27  ;;  %v1484_v46 = vld [vmem:[%s1883_s8 + $0x22] ss:$2 sm:$0xf]  ;;  %1578 = vmatprep.subr.mxu1 %v1487_v33  ;;  %v1491_v61 = vld [vmem:[%s1883_s8 + $0x30] ss:$2 sm:$0xf] }
  0x25   : > { %v1511_v48 = vld [vmem:[%s1883_s8 + $0x20] ss:$2 sm:$0xf]  ;;  %1293 = vperm.xlu1 %1692, %v1279_v37   ;;  %1289 = vperm.xlu0 %1691, %v1275_v42   ;;  %v561_v52 = vcombine.low %v1483_v45, %v1484_v46  ;;  %v1517_v63 = vld [vmem:[%s1883_s8 + $0x21] ss:$2 sm:$0xf]  ;;  %v658_v2 = vcombine.low %v1490_v60, %v1491_v61 }
  0x26   : > { %v1512_v49 = vld [vmem:[%s1883_s8 + $0x40] ss:$2 sm:$0xf]  ;;  %v1518_v0 = vld [vmem:[%s1883_s8 + $0x41] ss:$2 sm:$0xf] }
  0x27   : > { %v948_v53 = vcombine.low %v1511_v48, %v1512_v49  ;;  %v1485_v56 = vld [vmem:[%s1883_s8 + $0x42] ss:$2 sm:$0xf]  ;;  %v1045_v3 = vcombine.low %v1517_v63, %v1518_v0  ;;  %v1492_v5 = vld [vmem:[%s1883_s8 + $0x50] ss:$2 sm:$0xf] }
  0x28   : > { %v1486_v57 = vld [vmem:[%s1883_s8 + $0x62] ss:$2 sm:$0xf]  ;;  %v1493_v6 = vld [vmem:[%s1883_s8 + $0x70] ss:$2 sm:$0xf] }
  0x29   : > { %1576 = vmatmul.mubr.msk.f32.vlgmr.msra.gmra.mrb[0].mxu1 %vm382_vm0, %v467_v47  ;;  %1297 = vperm.xlu1 %1692, %v1283_v50   ;;  %v1513_v58 = vld [vmem:[%s1883_s8 + $0x60] ss:$2 sm:$0xf]  ;;  %v562_v62 = vcombine.low %v1485_v56, %v1486_v57  ;;  %v1519_v7 = vld [vmem:[%s1883_s8 + $0x61] ss:$2 sm:$0xf]  ;;  %v659_v11 = vcombine.low %v1492_v5, %v1493_v6 }
  0x2a   : > { %1596 = vmatmul.mubr.msk.f32.vlgmr.msra.gmra.mrb[0].mxu0 %vm382_vm0, %v853_v51  ;;  %1579 = vmatpush3.msra.mxu1 %v1487_v33  ;;  %v941_v59 = vld [vmem:[%s1923_s16] ss:$2 sm:$0xf]  ;;  %v1520_v8 = vld [vmem:[%s1923_s16 + $0x1] ss:$2 sm:$0xf] }
  0x2b   : > { %1599 = vmatpush3.msra.mxu0 %v1514_v27  ;;  %1580 = vmatprep.mubr.msk.f32.mxu1 %vm382_vm0, %v561_v52  ;;  %v949_v1 = vcombine.low %v1513_v58, %v941_v59  ;;  %v1528_v4 = vld [vmem:[%s2030_s2 + $0x40] sm:$0xff]  ;;  %v1046_v12 = vcombine.low %v1519_v7, %v1520_v8  ;;  %s313_s9 = sand.u32 1, %s1755_s19   ;;  %s1697_s27 = sshll.u32 %s1775_s25, 4  ;;  %s1698_s27 = int_to_ptr.vmem [resolvable:$false] %s1697_s27 }
  0x2c   : > { %1600 = vmatprep.mubr.msk.f32.mxu0 %vm382_vm0, %v948_v53  ;;  %1603 = vmatprep.subr.mxu0 %v1521_v54  ;;  %v1524_v9 = vld [vmem:[%s1883_s8 + $0x22] ss:$2 sm:$0xf]  ;;  %v1531_v20 = vld [vmem:[%s2031_s3] ss:$0 sm:$0xff]  ;;  %s1467_s12 = sshll.u32 %s313_s9, 4 }
  0x2d   : > { %1583 = vmatprep.subr.mxu1 %v1494_v55  ;;  %v1525_v10 = vld [vmem:[%s1883_s8 + $0x42] ss:$2 sm:$0xf]  ;;  %s1982_s21 = scalar_lea.sflag [#allocation3], %s313_s9  ;;  %s1699_s29 = scalar_lea.vmem %s1698_s27, 512 }
  0x2e   : > { %v1142_v13 = vcombine.low %v1524_v9, %v1525_v10  ;;  %v1526_v14 = vld [vmem:[%s1883_s8 + $0x62] ss:$2 sm:$0xf]  ;;  %s315_s8 = scalar_lea.vmem [#allocation2], %s1467_s12 }
  0x2f   : > { %v1527_v15 = vld [vmem:[%s1923_s16 + $0x2] ss:$2 sm:$0xf]  ;;  %s1325_s13 = sshll.u32 %s315_s8, 4  ;;  %s1970_s13 = int_to_ptr.vmem [resolvable:$true] %s1325_s13 }
  0x30   : > { %v1143_v16 = vcombine.low %v1526_v14, %v1527_v15  ;;  %s1693_s24 = scalar_lea.vmem %s1970_s13, 256  ;;  %p1700_p1 = scmp.lt.s32.totalorder %s1970_s13, %s1698_s27 }
  0x31   : > { %1581 = vmatmul.mubr.msk.f32.vlgmr.msra.gmra.mrb[0].mxu1 %vm382_vm0, %v562_v62  ;;  %p1694_p12 = scmp.ne.s32.totalorder %s1970_s13, %s1693_s24  ;;  %p1701_p2 = scmp.lt.s32.totalorder %s1699_s29, %s1693_s24 }
  0x32   : > { %1601 = vmatmul.mubr.msk.f32.vlgmr.msra.gmra.mrb[0].mxu0 %vm382_vm0, %v949_v1  ;;  %1584 = vmatpush3.msra.mxu1 %v1494_v55 }
  0x33   : > { %1604 = vmatpush3.msra.mxu0 %v1521_v54  ;;  %1585 = vmatprep.mubr.msk.f32.mxu1 %vm382_vm0, %v658_v2  ;;  %p1695_p13 = pnand %p1694_p12, %p1848_p4  ;;  %p1702_p3 = por %p1701_p2, %p1700_p1 }
  0x34   : > { %1605 = vmatprep.mubr.msk.f32.mxu0 %vm382_vm0, %v1045_v3  ;;  %1608 = vmatprep.subr.mxu0 %v1528_v4 }
  0x35   : > { %p1696_p0 = pneg %p1695_p13 }
  0x37   : > { %p1703_p5 = pnand %p1702_p3, %p1696_p0 }
  0x39   : > { %1586 = vmatmul.mubr.msk.f32.vlgmr.msra.gmra.mrb[0].mxu1 %vm382_vm0, %v659_v11 }
  0x3a   : > { %1606 = vmatmul.mubr.msk.f32.vlgmr.msra.gmra.mrb[0].mxu0 %vm382_vm0, %v1046_v12 }
  0x3b   : > { %1609 = vmatpush3.msra.mxu0 %v1528_v4  ;;  %1610 = vmatprep.mubr.msk.f32.mxu0 %vm382_vm0, %v1142_v13 }
  0x42   : > { %1611 = vmatmul.mubr.msk.f32.vlgmr.msra.gmra.mrb[0].mxu0 %vm382_vm0, %v1143_v16 }
  0x9f   : > { %v1286_v26 = vpop.permute.xlu0 %1285 }
  0xa4   : > { %v1294_v23 = vpop.permute.xlu1 %1293  ;;  %v1290_v35 = vpop.permute.xlu0 %1289 }
  0xa8   : > { %v1298_v34 = vpop.permute.xlu1 %1297 }
 0x10c   : > { %v1587_v17 = vpop.f32.mrb[0].mxu1 }
 0x10d   : > { %v730_v18 = vpop.f32.mrb[1].mxu1 }
 0x115   : > { %v1612_v19 = vpop.f32.mrb[0].mxu0 }
 0x116   : > { %v1613_v21 = vadd.f32 %v1612_v19, %v1587_v17  ;;  %v1214_v22 = vpop.f32.mrb[1].mxu0 }
 0x117   : > { %v1614_v24 = vadd.f32 %v1214_v22, %v730_v18 }
 0x118   : > { %v1233_v25 = vadd.f32 %v1613_v21, %v1531_v20 }
 0x119   : > { %v1232_v27 = vadd.f32 %v1614_v24, %v1531_v20 }
 0x11a   : > { %v1235_v28 = vmax.f32 %v1233_v25, 0.0 }
 0x11b   : > { %v1234_v29 = vmax.f32 %v1232_v27, 0.0 }
 0x11c   : > { %v1302_v30 = vmul.f32 %v1294_v23, %v1235_v28  ;;  %v1239_v31 = vcombine.high %v1235_v28, %v1235_v28 }
 0x11d   : > { %v1300_v32 = vmul.f32 %v1286_v26, %v1234_v29  ;;  %v1238_v33 = vcombine.high %v1234_v29, %v1234_v29 }
 0x11e   : > { %1307 = vst.msk [vmem:[%s315_s8 + $0x8] sm:$0xf] %vm1304_vm1, %v1302_v30  ;;  %v1303_v36 = vmul.f32 %v1298_v34, %v1239_v31 }
 0x11f   : > { %1305 = vst.msk [vmem:[%s315_s8] sm:$0xf] %vm1304_vm1, %v1300_v32  ;;  %v1301_v37 = vmul.f32 %v1290_v35, %v1238_v33 }
 0x120   : > { %1308 = vst.msk [vmem:[%s315_s8 + $0xc] sm:$0xf] %vm1304_vm1, %v1303_v36 }
 0x121   : > { %1306 = vst.msk [vmem:[%s315_s8 + $0x4] sm:$0xf] %vm1304_vm1, %v1301_v37 }
 0x122   : > { %1706 = shalt.err (!%p1703_p5)
}
 0x123   : > { %s1707_s7 = scalar_lea.hbm %s1975_s17, 256  ;;  %s1711_s11 = scalar_lea.hbm %s2033_s5, 512 }
 0x124   : > { %p1708_p6 = scmp.ne.s32.totalorder %s1975_s17, %s1707_s7  ;;  %p1712_p10 = scmp.lt.u32.totalorder %s1975_s17, %s2033_s5 }
 0x125   : > { %p1713_p11 = scmp.lt.u32.totalorder %s1711_s11, %s1707_s7  ;;  %p1715_p13 = scmp.lt.u32.totalorder %s1707_s7, %s1975_s17 }
 0x126   : > { %p1709_p7 = pnand %p1708_p6, %p1848_p4 }
 0x127   : > { %p1714_p12 = por %p1713_p11, %p1712_p10 }
 0x128   : > { %p1710_p9 = pneg %p1709_p7 }
 0x129   : > { %p1716_p0 = por %p1715_p13, %p1714_p12 }
 0x12b   : > { %p1717_p1 = pnand %p1716_p0, %p1710_p9 }
 0x12d   : > { %1720 = shalt.err (!%p1717_p1)
}
 0x12e   : > { %s1776_s14 = smov 64   ;;  %s1777_s15 = smov 4  }
 0x12f   : > { %1631 = dma.vmem_to_hbm [thread:$0]  (%p1848_p4), %s1970_s13, 256, %s1975_s17, %s1982_s21, %s1776_s14, %s1776_s14, %s1777_s15  }
 0x130 PF: > { %p1638_p2 = scmp.ge.s32.totalorder %s1771_s23, 2  ;;  %s1340_s16 = sand.u32 1, %s1751_s18  }
 0x131   : > { %s1341_s24 = scalar_lea.sflag [#allocation3], %s1340_s16 }
 0x132   : > { %p1634_p3 = pnand %p1638_p2, %p1855_p8 }
 0x134   : > { %1746 = dma.done.wait (!%p1634_p3), %s1341_s24, 256  }
 0x135   : > { %1748 = vsyncadd (!%p1634_p3), %s1341_s24, 4294967040  ;;  %s18_s23 = sadd.s32 1, %s1771_s23   ;;  %s2036_s18 = smov %s1755_s19 }
 0x136   : > { %p15_p5 = scmp.ge.s32.totalorder %s18_s23, 4   ;;  %s2037_s19 = smov %s1759_s20 }
 0x137   : > { %s2038_s20 = smov %s1861_s6  ;;  %s2039_s21 = smov %s1767_s22 }
 0x138   : > { %s2040_s22 = smov %s2042_s26  ;;  %17 = sbr.rel (!%p15_p5) target bundleno = 4 (0x4), region = 123 }
 0x13f   :  { %1346 = vsyncpa [#allocation3], 1 }
 0x140   :  { %1348 = vsyncpa [#allocation3 + $0x1], 1 }

</bundles_post_ra>
